<compile_context>
chip_gen: v5e
topology: v5e:2x2
jax: 0.10.0
libtpu: 0.0.40
codegen_flags: <defaults>
</compile_context>

<pallas_src>
import functools

import jax
import jax.numpy as jnp
from jax.experimental import pallas as pl
from jax.experimental.pallas import tpu as pltpu


def _mha_kernel(x_ref, wqkv_ref, bqkv_ref, wproj_ref, bproj_ref, o_ref, *,
                num_heads, head_dim, batch_tile, seq_len, dim):
    TB, S, D = batch_tile, seq_len, dim
    H, hd = num_heads, head_dim
    md = wqkv_ref.dtype                       # MXU operand dtype (f32 or bf16)

    # --- Fused QKV projection: one MXU pass with N = 3D lanes. -------------
    x = x_ref[...].reshape(TB * S, D)
    qkv = jnp.dot(x, wqkv_ref[...], preferred_element_type=jnp.float32)
    qkv = qkv + bqkv_ref[...]                 # (TB*S, 3D) f32; scale folded in Q

    def heads(m):
        # (TB*S, D) -> (TB*H, S, hd): head-major layout for 3-D batched einsums.
        return jnp.transpose(m.reshape(TB, S, H, hd), (0, 2, 1, 3)).reshape(
            TB * H, S, hd)

    q = heads(qkv[:, 0 * D:1 * D]).astype(md)
    k = heads(qkv[:, 1 * D:2 * D]).astype(md)
    v = heads(qkv[:, 2 * D:3 * D]).astype(md)

    # --- Scores + softmax (softmax math in f32 on VPU/EUP). ----------------
    s = jnp.einsum("bqd,bkd->bqk", q, k,
                   preferred_element_type=jnp.float32)          # (TB*H, S, S)
    s = s - jnp.max(s, axis=-1, keepdims=True)
    p = jnp.exp(s)
    p = p * pl.reciprocal(jnp.sum(p, axis=-1, keepdims=True), approx=True)
    # attention dropout: identity (inference)

    ctx = jnp.einsum("bqk,bkd->bqd", p.astype(md), v,
                     preferred_element_type=jnp.float32)        # (TB*H, S, hd)

    # --- Head-concat as a reshape, then a single output projection. --------
    ctx = jnp.transpose(ctx.reshape(TB, H, S, hd), (0, 2, 1, 3)).reshape(
        TB * S, D)
    out = jnp.dot(ctx.astype(md), wproj_ref[...],
                  preferred_element_type=jnp.float32) + bproj_ref[...]

    o_ref[...] = out.reshape(TB, S, D).astype(o_ref.dtype)


def multi_head_attention(x, wqkv, bqkv, wproj, bproj, *, num_heads,
                         num_batch_tiles=None, mxu_dtype=None):
    """x: (B,S,D); wqkv: (3D,D); bqkv: (3D,); wproj: (D,D); bproj: (D,)."""
    B, S, D = x.shape
    H = num_heads
    assert D % H == 0
    hd = D // H
    scale = hd ** (-0.5)
    out_dtype = x.dtype
    mxu_dtype = out_dtype if mxu_dtype is None else mxu_dtype

    if num_batch_tiles is None:
        # Two parallel grid steps feed both v7x TensorCores; the rest of the
        # batch is folded into the MXU M dimension inside each step (the
        # v5e/v6e win -- per-step overhead amortized, taller matmuls).
        num_batch_tiles = 2 if (B >= 2 and B % 2 == 0) else 1
    assert B % num_batch_tiles == 0
    batch_tile = B // num_batch_tiles

    # Wrapper-side weight prep (one-time XLA ops, free vs. the kernel):
    #  - fused (D, 3D) QKV weight, transposed to (in, out), scale folded into
    #    the Q slab (weight and bias),
    #  - 2-D (1, N) f32 biases for lane-major broadcast,
    #  - plain (D, D) output projection (head-concat happens as a reshape),
    #  - optional bf16 cast of the MXU operands (weights + activations).
    wq_t = jnp.transpose(wqkv[0 * D:1 * D, :]) * scale
    wk_t = jnp.transpose(wqkv[1 * D:2 * D, :])
    wv_t = jnp.transpose(wqkv[2 * D:3 * D, :])
    wqkv_t = jnp.concatenate([wq_t, wk_t, wv_t], axis=1).astype(mxu_dtype)  # (D, 3D)
    bqkv_f = jnp.concatenate([bqkv[0 * D:1 * D] * scale,
                              bqkv[1 * D:2 * D],
                              bqkv[2 * D:3 * D]]).reshape(1, 3 * D).astype(jnp.float32)
    wp_t = jnp.transpose(wproj).astype(mxu_dtype)                           # (D, D)
    bp = bproj.reshape(1, D).astype(jnp.float32)
    xin = x.astype(mxu_dtype)

    kernel = functools.partial(_mha_kernel, num_heads=H, head_dim=hd,
                               batch_tile=batch_tile, seq_len=S, dim=D)
    const2 = lambda b: (0, 0)

    return pl.pallas_call(
        kernel,
        out_shape=jax.ShapeDtypeStruct((B, S, D), out_dtype),
        grid_spec=pltpu.PrefetchScalarGridSpec(
            num_scalar_prefetch=0,
            grid=(num_batch_tiles,),
            in_specs=[
                pl.BlockSpec((batch_tile, S, D), lambda b: (b, 0, 0)),  # x tile
                pl.BlockSpec((D, 3 * D), const2),                       # fused W_qkv^T
                pl.BlockSpec((1, 3 * D), const2),                       # fused b_qkv
                pl.BlockSpec((D, D), const2),                           # W_proj^T
                pl.BlockSpec((1, D), const2),                           # b_proj
            ],
            out_specs=pl.BlockSpec((batch_tile, S, D), lambda b: (b, 0, 0)),
        ),
        compiler_params=pltpu.CompilerParams(
            dimension_semantics=("parallel",)),
    )(xin, wqkv_t, bqkv_f, wp_t, bp)


def reference_mha(x, wqkv, bqkv, wproj, bproj, *, num_heads):
    """Pure-JAX reference mirroring the PyTorch forward (dropout = identity)."""
    B, S, D = x.shape
    hd = D // num_heads
    scale = hd ** (-0.5)
    qkv = x @ wqkv.T + bqkv                           # (B, S, 3D)
    qkv = qkv.reshape(B, S, 3, num_heads, hd)
    qkv = jnp.transpose(qkv, (2, 0, 3, 1, 4))         # (3, B, H, S, hd)
    q, k, v = qkv[0], qkv[1], qkv[2]
    attn = jnp.einsum("bhqd,bhkd->bhqk", q, k) * scale
    attn = jax.nn.softmax(attn, axis=-1)
    out = jnp.einsum("bhqk,bhkd->bhqd", attn, v)      # (B, H, S, hd)
    out = jnp.transpose(out, (0, 2, 1, 3)).reshape(B, S, D)
    return out @ wproj.T + bproj


if __name__ == "__main__":
    B, S, D = 2, 8, 32
    num_heads = 4

    key = jax.random.PRNGKey(0)
    kx, kw1, kb1, kw2, kb2 = jax.random.split(key, 5)

    x = jax.random.normal(kx, (B, S, D), dtype=jnp.float32)
    # Deterministic synthetic parameters (scaled like PyTorch defaults-ish).
    wqkv = jax.random.normal(kw1, (3 * D, D), dtype=jnp.float32) * (1.0 / D ** 0.5)
    bqkv = jax.random.normal(kb1, (3 * D,), dtype=jnp.float32) * 0.01
    wproj = jax.random.normal(kw2, (D, D), dtype=jnp.float32) * (1.0 / D ** 0.5)
    bproj = jax.random.normal(kb2, (D,), dtype=jnp.float32) * 0.01

    ref = reference_mha(x, wqkv, bqkv, wproj, bproj, num_heads=num_heads)

    # f32 MXU operands (v5e-safe baseline path).
    out = multi_head_attention(x, wqkv, bqkv, wproj, bproj, num_heads=num_heads)
    out = jax.block_until_ready(out)
    assert out.shape == (B, S, D)
    # Tolerance covers the EUP approximate reciprocal in the softmax
    # normalization (relative error ~1e-3 after the projection sum).
    assert jnp.allclose(out, ref, atol=1e-2, rtol=1e-2), "f32 path mismatch"

    # bf16 MXU-operand path (v6e/v7x recommendation): f32 accumulation and
    # f32 softmax, so only bf16 operand rounding contributes; loose check.
    out_bf16 = multi_head_attention(x, wqkv, bqkv, wproj, bproj,
                                    num_heads=num_heads,
                                    mxu_dtype=jnp.bfloat16)
    out_bf16 = jax.block_until_ready(out_bf16)
    assert out_bf16.shape == (B, S, D)
    assert jnp.allclose(out_bf16, ref, atol=1e-1, rtol=1e-1), "bf16 path mismatch"

    print("KERNEL_OK")
</pallas_src>

<mosaic_0001>
module attributes {stable_mosaic.version = 11 : i64} {
  func.func @_mha_kernel(%arg0: i32, %arg1: memref<1x8x32xf32, #tpu.memory_space<vmem>>, %arg2: memref<32x96xf32, #tpu.memory_space<vmem>>, %arg3: memref<1x96xf32, #tpu.memory_space<vmem>>, %arg4: memref<32x32xf32, #tpu.memory_space<vmem>>, %arg5: memref<1x32xf32, #tpu.memory_space<vmem>>, %arg6: memref<1x8x32xf32, #tpu.memory_space<vmem>>) attributes {dimension_semantics = [#tpu.dimension_semantics<parallel>], iteration_bounds = array<i64: 2>, scalar_prefetch = 0 : i64, scratch_operands = 0 : i64, tpu.core_type = #tpu.core_type<tc>, window_params = [{transform_indices = @transform_0, window_bounds = array<i64: 1, 8, 32>}, {pipeline_mode = #tpu.pipeline_mode<synchronous>, transform_indices = @transform_1, window_bounds = array<i64: 32, 96>}, {pipeline_mode = #tpu.pipeline_mode<synchronous>, transform_indices = @transform_2, window_bounds = array<i64: 1, 96>}, {pipeline_mode = #tpu.pipeline_mode<synchronous>, transform_indices = @transform_3, window_bounds = array<i64: 32, 32>}, {pipeline_mode = #tpu.pipeline_mode<synchronous>, transform_indices = @transform_4, window_bounds = array<i64: 1, 32>}, {transform_indices = @transform_5, window_bounds = array<i64: 1, 8, 32>}]} {
    %c0 = arith.constant 0 : index
    %c0_0 = arith.constant 0 : index
    %c0_1 = arith.constant 0 : index
    %0 = vector.load %arg1[%c0, %c0_0, %c0_1] : memref<1x8x32xf32, #tpu.memory_space<vmem>>, vector<1x8x32xf32>
    %1 = vector.shape_cast %0 : vector<1x8x32xf32> to vector<8x32xf32>
    %c0_2 = arith.constant 0 : index
    %c0_3 = arith.constant 0 : index
    %2 = vector.load %arg2[%c0_2, %c0_3] : memref<32x96xf32, #tpu.memory_space<vmem>>, vector<32x96xf32>
    %cst = arith.constant dense<0.000000e+00> : vector<8x96xf32>
    %3 = tpu.matmul %1, %2, %cst {dimension_numbers = #tpu.dot_dimension_numbers<[1], [0], [0], [1], [0, 0, 1, 1], [], []>} : vector<8x32xf32>, vector<32x96xf32>, vector<8x96xf32> -> vector<8x96xf32>
    %c0_4 = arith.constant 0 : index
    %c0_5 = arith.constant 0 : index
    %4 = vector.load %arg3[%c0_4, %c0_5] : memref<1x96xf32, #tpu.memory_space<vmem>>, vector<1x96xf32>
    %5 = vector.broadcast %4 : vector<1x96xf32> to vector<8x96xf32>
    %6 = arith.addf %3, %5 : vector<8x96xf32>
    %7 = vector.extract_strided_slice %6 {offsets = [0, 0], sizes = [8, 32], strides = [1, 1]} : vector<8x96xf32> to vector<8x32xf32>
    %8 = vector.shape_cast %7 : vector<8x32xf32> to vector<1x8x4x8xf32>
    %9 = tpu.transpose %8, [0, 2, 1, 3] : vector<1x8x4x8xf32> -> vector<1x4x8x8xf32>
    %10 = vector.shape_cast %9 : vector<1x4x8x8xf32> to vector<4x8x8xf32>
    %11 = vector.extract_strided_slice %6 {offsets = [0, 32], sizes = [8, 32], strides = [1, 1]} : vector<8x96xf32> to vector<8x32xf32>
    %12 = vector.shape_cast %11 : vector<8x32xf32> to vector<1x8x4x8xf32>
    %13 = tpu.transpose %12, [0, 2, 1, 3] : vector<1x8x4x8xf32> -> vector<1x4x8x8xf32>
    %14 = vector.shape_cast %13 : vector<1x4x8x8xf32> to vector<4x8x8xf32>
    %15 = vector.extract_strided_slice %6 {offsets = [0, 64], sizes = [8, 32], strides = [1, 1]} : vector<8x96xf32> to vector<8x32xf32>
    %16 = vector.shape_cast %15 : vector<8x32xf32> to vector<1x8x4x8xf32>
    %17 = tpu.transpose %16, [0, 2, 1, 3] : vector<1x8x4x8xf32> -> vector<1x4x8x8xf32>
    %18 = vector.shape_cast %17 : vector<1x4x8x8xf32> to vector<4x8x8xf32>
    "tpu.trace_start"() <{level = 10 : i32, message = "bqd,bkd->bqk"}> : () -> ()
    %cst_6 = arith.constant dense<0.000000e+00> : vector<4x8x8xf32>
    %19 = tpu.matmul %10, %14, %cst_6 {dimension_numbers = #tpu.dot_dimension_numbers<[2], [2], [1], [1], [0, 0, 0, 1, 1, 1], [0], [0]>} : vector<4x8x8xf32>, vector<4x8x8xf32>, vector<4x8x8xf32> -> vector<4x8x8xf32>
    "tpu.trace_stop"() : () -> ()
    %cst_7 = arith.constant dense<0xFF800000> : vector<4x8xf32>
    %20 = vector.multi_reduction <maximumf>, %19, %cst_7 [2] : vector<4x8x8xf32> to vector<4x8xf32>
    %21 = vector.shape_cast %20 : vector<4x8xf32> to vector<4x8x1xf32>
    %22 = vector.broadcast %21 : vector<4x8x1xf32> to vector<4x8x8xf32>
    %23 = arith.subf %19, %22 : vector<4x8x8xf32>
    %24 = math.exp %23 : vector<4x8x8xf32>
    %cst_8 = arith.constant dense<0.000000e+00> : vector<4x8xf32>
    %25 = vector.multi_reduction <add>, %24, %cst_8 [2] : vector<4x8x8xf32> to vector<4x8xf32>
    %26 = vector.shape_cast %25 : vector<4x8xf32> to vector<4x8x1xf32>
    %27 = tpu.reciprocal %26 {approx = true} : vector<4x8x1xf32> -> vector<4x8x1xf32>
    %28 = vector.broadcast %27 : vector<4x8x1xf32> to vector<4x8x8xf32>
    %29 = arith.mulf %24, %28 : vector<4x8x8xf32>
    "tpu.trace_start"() <{level = 10 : i32, message = "bqk,bkd->bqd"}> : () -> ()
    %cst_9 = arith.constant dense<0.000000e+00> : vector<4x8x8xf32>
    %30 = tpu.matmul %29, %18, %cst_9 {dimension_numbers = #tpu.dot_dimension_numbers<[2], [1], [1], [2], [0, 0, 0, 1, 1, 2], [0], [0]>} : vector<4x8x8xf32>, vector<4x8x8xf32>, vector<4x8x8xf32> -> vector<4x8x8xf32>
    "tpu.trace_stop"() : () -> ()
    %31 = vector.shape_cast %30 : vector<4x8x8xf32> to vector<1x4x8x8xf32>
    %32 = tpu.transpose %31, [0, 2, 1, 3] : vector<1x4x8x8xf32> -> vector<1x8x4x8xf32>
    %33 = vector.shape_cast %32 : vector<1x8x4x8xf32> to vector<8x32xf32>
    %c0_10 = arith.constant 0 : index
    %c0_11 = arith.constant 0 : index
    %34 = vector.load %arg4[%c0_10, %c0_11] : memref<32x32xf32, #tpu.memory_space<vmem>>, vector<32x32xf32>
    %cst_12 = arith.constant dense<0.000000e+00> : vector<8x32xf32>
    %35 = tpu.matmul %33, %34, %cst_12 {dimension_numbers = #tpu.dot_dimension_numbers<[1], [0], [0], [1], [0, 0, 1, 1], [], []>} : vector<8x32xf32>, vector<32x32xf32>, vector<8x32xf32> -> vector<8x32xf32>
    %c0_13 = arith.constant 0 : index
    %c0_14 = arith.constant 0 : index
    %36 = vector.load %arg5[%c0_13, %c0_14] : memref<1x32xf32, #tpu.memory_space<vmem>>, vector<1x32xf32>
    %37 = vector.broadcast %36 : vector<1x32xf32> to vector<8x32xf32>
    %38 = arith.addf %35, %37 : vector<8x32xf32>
    %39 = vector.shape_cast %38 : vector<8x32xf32> to vector<1x8x32xf32>
    %c0_15 = arith.constant 0 : index
    %c0_16 = arith.constant 0 : index
    %c0_17 = arith.constant 0 : index
    %40 = vector.load %arg6[%c0_15, %c0_16, %c0_17] : memref<1x8x32xf32, #tpu.memory_space<vmem>>, vector<1x8x32xf32>
    tpu.vector_store %arg6[%c0_15, %c0_16, %c0_17], %39 {strides = array<i32>} : memref<1x8x32xf32, #tpu.memory_space<vmem>>, vector<1x8x32xf32>,
    return
  }
  func.func @transform_0(%arg0: i32) -> (i32, i32, i32) {
    %c0_i32 = arith.constant 0 : i32
    %c0_i32_0 = arith.constant 0 : i32
    %c0_i32_1 = arith.constant 0 : i32
    return %arg0, %c0_i32, %c0_i32_0 : i32, i32, i32
  }
  func.func @transform_1(%arg0: i32) -> (i32, i32) {
    %c0_i32 = arith.constant 0 : i32
    %c0_i32_0 = arith.constant 0 : i32
    %c0_i32_1 = arith.constant 0 : i32
    return %c0_i32, %c0_i32_0 : i32, i32
  }
  func.func @transform_2(%arg0: i32) -> (i32, i32) {
    %c0_i32 = arith.constant 0 : i32
    %c0_i32_0 = arith.constant 0 : i32
    %c0_i32_1 = arith.constant 0 : i32
    return %c0_i32, %c0_i32_0 : i32, i32
  }
  func.func @transform_3(%arg0: i32) -> (i32, i32) {
    %c0_i32 = arith.constant 0 : i32
    %c0_i32_0 = arith.constant 0 : i32
    %c0_i32_1 = arith.constant 0 : i32
    return %c0_i32, %c0_i32_0 : i32, i32
  }
  func.func @transform_4(%arg0: i32) -> (i32, i32) {
    %c0_i32 = arith.constant 0 : i32
    %c0_i32_0 = arith.constant 0 : i32
    %c0_i32_1 = arith.constant 0 : i32
    return %c0_i32, %c0_i32_0 : i32, i32
  }
  func.func @transform_5(%arg0: i32) -> (i32, i32, i32) {
    %c0_i32 = arith.constant 0 : i32
    %c0_i32_0 = arith.constant 0 : i32
    %c0_i32_1 = arith.constant 0 : i32
    return %arg0, %c0_i32, %c0_i32_0 : i32, i32, i32
  }
}

</mosaic_0001>

<bundles_post_ra>
// kernel: tpu_custom_call.1
= control target key start
LH: loop header
LB: loop body
LE: loop exit
PB: predicated region body
PF: predicated region fallthrough
CT: control target
= control target key end

     0   :  { %10 = vsyncpa [#allocation3], 0  ;;  %s1907_s0 = inlined_call_operand.hbm [shape: f32[2,8,32], index: 0, kind: input, shape index: {}]   ;;  %s1908_s1 = inlined_call_operand.hbm [shape: f32[32,96], index: 1, kind: input, shape index: {}]   ;;  %s1909_s2 = inlined_call_operand.vmem [shape: f32[1,96], index: 2, kind: input, shape index: {}]   ;;  %s1910_s3 = inlined_call_operand.hbm [shape: f32[32,32], index: 3, kind: input, shape index: {}]   ;;  %s1911_s4 = inlined_call_operand.vmem [shape: f32[1,32], index: 4, kind: input, shape index: {}]   ;;  %s1912_s5 = inlined_call_operand.hbm [shape: f32[2,8,32], index: 5, kind: output, shape index: {}]  }
   0x1   :  { %12 = vsyncpa [#allocation3 + $0x1], 0 }
   0x2   :  { %13 = vsyncpa [#allocation6], 0 }
   0x3   :  { %14 = vsyncpa [#allocation4], 0 }
   0x4   :  { %16 = vsyncpa [#allocation4 + $0x1], 0  ;;  %s1521_s18 = smov 0   ;;  %s1523_s19 = smov 0  }
   0x5   :  { %s1525_s20 = smov 0   ;;  %s1527_s21 = smov 0  }
   0x6 LB: > { %s174_s24 = sshll.u32 %s1908_s1, 4  ;;  %s1545_s25 = sadd.s32 4294967295, %s1475_s21   ;;  %s1475_s21 = sphi %s1527_s21, %s1923_s21   ;;  %s1471_s20 = sphi %s1525_s20, %s1922_s20   ;;  %s1467_s19 = sphi %s1523_s19, %s1921_s19   ;;  %s1463_s18 = sphi %s1521_s18, %s1920_s18   ;;  %s175_s24 = int_to_ptr.hbm [resolvable:$true] %s174_s24 }
   0x7   : > { %p1179_p0 = scmp.ge.s32.totalorder %s1475_s21, 1  ;;  %p43_p1 = scmp.eq.s32.totalorder %s1545_s25, 0 }
   0x8   : > { %p163_p2 = scmp.lt.s32.totalorder %s1475_s21, 3  ;;  %s1477_s27 = smov [#allocation5]  }
   0x9   : > { %s176_s28 = sshll.u32 %s1477_s27, 4  ;;  %s191_s6 = sshll.u32 %s1910_s3, 4  ;;  %s177_s28 = int_to_ptr.vmem [resolvable:$true] %s176_s28  ;;  %s192_s6 = int_to_ptr.hbm [resolvable:$true] %s191_s6 }
   0xa   : > { %p1550_p3 = pnand %p1179_p0, %p163_p2  ;;  %s1478_s7 = smov [#allocation7]  }
   0xb   : > { %s193_s8 = sshll.u32 %s1478_s7, 4  ;;  %s1479_s9 = smov 128   ;;  %s194_s8 = int_to_ptr.vmem [resolvable:$true] %s193_s8 }
   0xc   : > { %p1220_p4 = pneg %p1550_p3  ;;  %s1480_s10 = smov 8  }
   0xd   : > { %s1178_s11 = sadd.s32 4294967294, %s1475_s21   ;;  %s1564_s12 = sadd.s32 1, %s1475_s21  }
   0xe   : > { %p1221_p6 = pnand %p1220_p4, %p43_p1  ;;  %s26_s13 = ssub.s32 %s1475_s21, %s1564_s12 }
   0xf   : > { %s29_s14 = sadd.s32 1, %s1471_s20  ;;  %p27_p7 = scmp.eq.s32.totalorder %s26_s13, 0 }
  0x10   : > { %1223 = dma.hbm_to_vmem [thread:$0]  (!%p1221_p6), %s175_s24, 512, %s177_s28, [#allocation6], %s1479_s9, %s1479_s9, %s1480_s10  }
  0x11   : > { %1226 = dma.hbm_to_vmem [thread:$0]  (!%p1221_p6), %s192_s6, 512, %s194_s8, [#allocation6], %s1479_s9, %s1479_s9, %s1480_s10  }
  0x12   : > { %p36_p8 = scmp.ne.s32.totalorder %s1471_s20, %s1467_s19  ;;  %p37_p9 = scmp.eq.s32.totalorder %s1475_s21, 0 }
  0x13   : > { %p42_p10 = scmp.ne.s32.totalorder %s1467_s19, %s1463_s18  ;;  %p150_p13 = scmp.eq.s32.totalorder %s1545_s25, 1 }
  0x14   : > { %s1575_s15 = scalar_select %p27_p7, %s1471_s20, %s29_s14  }
  0x15   : > { %p1577_p11 = por %p37_p9, %p36_p8  ;;  %p1583_p12 = por %p43_p1, %p42_p10 }
  0x16   : > { %p156_p0 = scmp.eq.s32.totalorder %s1178_s11, 1  ;;  %p1237_p2 = scmp.lt.s32.totalorder %s1475_s21, 2 }
  0x17   : > { %s210_s22 = sand.u32 1, %s1471_s20   ;;  %p1590_p4 = por %p150_p13, %p36_p8 }
  0x18   : > { %p1594_p6 = por %p156_p0, %p42_p10  ;;  %s1183_s27 = sshll.u32 %s210_s22, 3 }
  0x19   : > { %s1184_s28 = sshll.u32 %s1475_s21, 3  ;;  %s214_s7 = scalar_lea.vmem [#allocation2], %s1183_s27 }
  0x1a   : > { %s218_s6 = scalar_lea.hbm %s1907_s0, %s1184_s28  ;;  %s222_s8 = sshll.u32 %s214_s7, 4  ;;  %s223_s8 = int_to_ptr.vmem [resolvable:$true] %s222_s8 }
  0x1b   : > { %s220_s9 = sshll.u32 %s218_s6, 4  ;;  %p1604_p7 = pnand %p1237_p2, %p1577_p11  ;;  %s221_s9 = int_to_ptr.hbm [resolvable:$true] %s220_s9 }
  0x1c   : > { %s211_s11 = scalar_lea.sflag [#allocation3], %s210_s22  ;;  %s1375_s13 = sshra.s32 %s221_s9, 4  ;;  %s1376_s13 = int_to_ptr.hbm [resolvable:$true] %s1375_s13 }
  0x1d   : > { %s1377_s14 = scalar_lea.hbm %s1376_s13, 8  ;;  %p1379_p9 = pneg %p1604_p7 }
  0x1e   : > { %p1378_p8 = scmp.ne.s32.totalorder %s1376_s13, %s1377_s14  ;;  %s1382_s29 = scalar_lea.hbm %s1907_s0, 16 }
  0x1f   : > { %p1383_p11 = scmp.lt.s32.totalorder %s1376_s13, %s1907_s0  ;;  %p1384_p0 = scmp.lt.s32.totalorder %s1382_s29, %s1377_s14 }
  0x20   : > { %p1380_p10 = pnand %p1379_p9, %p1378_p8 }
  0x21   : > { %p1385_p2 = por %p1384_p0, %p1383_p11 }
  0x22   : > { %p1381_p13 = pneg %p1380_p10 }
  0x24   : > { %p1386_p5 = pnand %p1385_p2, %p1381_p13 }
  0x26   : > { %1389 = shalt.err (!%p1386_p5)
}
  0x27   : > { %1230 = dma.hbm_to_vmem [thread:$0]  (!%p1604_p7), %s221_s9, 128, %s223_s8, %s211_s11  }
  0x28   : > { %231 = sbr.rel (%p1550_p3) target bundleno = 1240 (0x4d8), region = 40  ;;  %s1621_s22 = sand.u32 (!%p1550_p3), 1, %s1467_s19  }
  0x29   : > { %s1186_s6 = sshll.u32 (!%p1550_p3), %s1621_s22, 3  ;;  %s234_s7 = scalar_lea.sflag (!%p1550_p3), [#allocation3], %s1621_s22 }
  0x2a   : > { %s237_s13 = scalar_lea.vmem (!%p1550_p3), [#allocation2], %s1186_s6 }
  0x2d   : > { %1450 = dma.done.wait (%p1583_p12), %s234_s7, 128  }
  0x2e   : > { %1452 = vsyncadd (%p1583_p12), %s234_s7, 4294967168 }
  0x2f   : > { %1454 = dma.done.wait (%p43_p1), [#allocation6], 1024  }
  0x30   : > { %1456 = vsyncadd (%p43_p1), [#allocation6], 4294966272  ;;  %v279_v0 = vld [vmem:[#allocation5 + $0x18] sm:$0xff]  ;;  %v278_v1 = vld [vmem:[#allocation5 + $0x10] sm:$0xff]  ;;  %vm284_vm0 = vcmask 261120   ;;  %s1481_s8 = smov 96  }
  0x31   : > { %300 = vmatpush.msra.mxu0 %v279_v0  ;;  %v277_v2 = vld [vmem:[#allocation5 + $0x8] sm:$0xff]  ;;  %v276_v3 = vld [vmem:[#allocation5] sm:$0xff]  ;;  %v275_v4 = vld [vmem:[%s237_s13] sm:$0xff]  ;;  %s1482_s9 = smov 120   ;;  %s1483_s10 = smov 112   ;;  %vm319_vm1 = vcmask 1047556  }
  0x32   : > { %v1297_v5 = vld [vmem:[%s1909_s2] ss:$0 sm:$0xff]  ;;  %s1484_s11 = smov 104   ;;  %v1485_v11 = vmov 1983009808   ;;  %vm673_vm2 = vcmask 64512  }
  0x33   : > { %301 = vmatpush.msra.mxu0 %v278_v1  ;;  %v324_v12 = vunpack.c.l.s4 %v1485_v11  ;;  %v1486_v22 = vmov 1934713408   ;;  %s1487_s14 = smov 64   ;;  %s1488_s27 = smov 16   ;;  %vm1037_vm3 = vcmask 130048   ;;  %vm1039_vm4 = vcmask 195584  }
  0x34   : > { %v348_v23 = vunpack.c.l.s4 %v1486_v22  ;;  %s1489_s28 = smov 8   ;;  %s1490_s29 = smov 24  }
  0x35   : > { %302 = vmatpush.msra.mxu0 %v277_v2  ;;  %v1656_v15 = vunpack.c.0.s8 %v324_v12  ;;  %s1205_s30 = sshll.u32 %s1545_s25, 3  ;;  %s1074_s25 = scalar_lea.sflag [#allocation4], %s1621_s22 }
  0x36   : > { %v1672_v29 = vunpack.c.0.s8 %v348_v23  ;;  %s1084_s13 = scalar_lea.hbm %s1912_s5, %s1205_s30 }
  0x37   : > { %303 = vmatpush.msra.mxu0 %v276_v3 }
  0x38   : > { %1190 = vmatmul.msk.f32.vlgmr.msra.gmra.mxu0 %vm284_vm0, %v275_v4 }
  0xb5   : > { %v305_v6 = vpop.f32.mrf.mxu0 }
  0xb6   : > { %v1639_v7 = vadd.f32 %v1297_v5, %v305_v6 }
  0xb8   : > { %429 = vrot.lane.b32.xlu2 %v1639_v7, %s1481_s8  ;;  %309 = vrot.lane.b32.xlu1 %v1639_v7, %s1482_s9  ;;  %v321_v14 = vrot.slane %v1639_v7, 4 }
  0xb9   : > { %312 = vrot.lane.b32.xlu0 %v1639_v7, %s1483_s10  ;;  %s1088_s10 = sshll.u32 %s1084_s13, 4  ;;  %s1089_s10 = int_to_ptr.hbm [resolvable:$true] %s1088_s10 }
  0xc1   : > { %315 = vrot.lane.b32.xlu0 %v1639_v7, %s1484_s11  ;;  %s1419_s11 = sshra.s32 %s1089_s10, 4  ;;  %s1420_s11 = int_to_ptr.hbm [resolvable:$true] %s1419_s11 }
  0xc2   : > { %p1426_p12 = scmp.lt.s32.totalorder %s1420_s11, %s1912_s5 }
 0x112   : > { %v430_v33 = vpop.permute.xlu2 %429 }
 0x113   : > { %v443_v48 = vrot.slane %v430_v33, 4 }
 0x12a   : > { %v1645_v8 = vpop.permute.xlu1 %309 }
 0x12b   : > { %v1647_v9 = vpop.permute.xlu0 %312  ;;  %431 = vrot.lane.b32.xlu0 %v1645_v8, %s1481_s8  ;;  %v333_v16 = vrot.slane %v1645_v8, 4 }
 0x12c   : > { %433 = vrot.lane.b32.xlu1 %v1647_v9, %s1481_s8  ;;  %v318_v13 = vrot.slane %v1647_v9, 4  ;;  %v322_v17 = vsel %vm319_vm1, %v1647_v9, %v321_v14 }
 0x12d   : > { %v330_v21 = vperm.slane %v322_v17, %v1656_v15 }
 0x12e   : > { %v320_v19 = vsel %vm319_vm1, %v318_v13, %v1639_v7 }
 0x12f   : > { %v326_v25 = vperm.slane %v320_v19, %v1656_v15  ;;  %v357_v27 = vrot.slane %v330_v21, 4 }
 0x131   : > { %v345_v30 = vrot.slane %v326_v25, 4 }
 0x133   : > { %v1651_v10 = vpop.permute.xlu0 %315 }
 0x134   : > { %435 = vrot.lane.b32.xlu2 %v1651_v10, %s1481_s8  ;;  %v331_v18 = vrot.slane %v1651_v10, 4  ;;  %v334_v20 = vsel %vm319_vm1, %v1651_v10, %v333_v16  ;;  %s274_s8 = scalar_lea.vmem [#allocation8], %s1186_s6  ;;  %s1425_s6 = scalar_lea.hbm %s1912_s5, 16 }
 0x135   : > { %v342_v26 = vperm.slane %v334_v20, %v1656_v15  ;;  %s1086_s9 = sshll.u32 %s274_s8, 4  ;;  %s1087_s9 = int_to_ptr.vmem [resolvable:$true] %s1086_s9 }
 0x136   : > { %v332_v24 = vsel %vm319_vm1, %v331_v18, %v1645_v8 }
 0x137   : > { %v338_v28 = vperm.slane %v332_v24, %v1656_v15  ;;  %v355_v31 = vrot.slane %v342_v26, 4  ;;  %v358_v32 = vsel %vm319_vm1, %v342_v26, %v357_v27 }
 0x138   : > { %v366_v36 = vperm.slane %v358_v32, %v1672_v29 }
 0x139   : > { %v343_v34 = vrot.slane %v338_v28, 4  ;;  %v346_v35 = vsel %vm319_vm1, %v338_v28, %v345_v30  ;;  %v356_v37 = vsel %vm319_vm1, %v355_v31, %v330_v21 }
 0x13a   : > { %v354_v38 = vperm.slane %v346_v35, %v1672_v29  ;;  %v362_v40 = vperm.slane %v356_v37, %v1672_v29  ;;  %v373_v41 = vrot.slane %v366_v36, 4 }
 0x13b   : > { %v344_v39 = vsel %vm319_vm1, %v343_v34, %v326_v25 }
 0x13c   : > { %v350_v42 = vperm.slane %v344_v39, %v1672_v29  ;;  %v369_v43 = vrot.slane %v354_v38, 4  ;;  %v371_v45 = vrot.slane %v362_v40, 4  ;;  %v374_v46 = vsel %vm319_vm1, 0.0, %v373_v41 }
 0x13d   : > { %v391_v52 = vrot.slane %v374_v46, 4  ;;  %v386_v56 = vsel %vm319_vm1, %v373_v41, %v362_v40 }
 0x13e   : > { %v367_v50 = vrot.slane %v350_v42, 4  ;;  %v370_v51 = vsel %vm319_vm1, 0.0, %v369_v43  ;;  %v372_v60 = vsel %vm319_vm1, 0.0, %v371_v45  ;;  %v375_v63 = vsel %vm319_vm1, %v369_v43, %v350_v42 }
 0x13f   : > { %v380_v0 = vrot.slane %v370_v51, 4  ;;  %v379_v12 = vperm.slane %v375_v63, %v1656_v15  ;;  %v390_v13 = vperm.slane %v386_v56, %v1656_v15  ;;  %v392_v14 = vsel %vm319_vm1, %v391_v52, %v372_v60 }
 0x140   : > { %v368_v4 = vsel %vm319_vm1, 0.0, %v367_v50  ;;  %v396_v25 = vperm.slane %v392_v14, %v1656_v15 }
 0x141   : > { %v381_v19 = vsel %vm319_vm1, %v380_v0, %v368_v4  ;;  %v411_v30 = vrot.slane %v390_v13, 4  ;;  %v399_v32 = vrot.slane %v379_v12, 4 }
 0x142   : > { %v385_v28 = vperm.slane %v381_v19, %v1656_v15  ;;  %v409_v40 = vrot.slane %v396_v25, 4 }
 0x143   : > { %v412_v43 = vsel %vm319_vm1, %v396_v25, %v411_v30 }
 0x18e   : > { %v436_v44 = vpop.permute.xlu2 %435 }
 0x18f   : > { %v453_v47 = vrot.slane %v436_v44, 4 }
 0x19d   : > { %v432_v49 = vpop.permute.xlu0 %431 }
 0x19e   : > { %v434_v53 = vpop.permute.xlu1 %433  ;;  %v454_v54 = vsel %vm319_vm1, %v453_v47, %v432_v49  ;;  %v455_v55 = vrot.slane %v432_v49, 4 }
 0x19f   : > { %v441_v57 = vrot.slane %v434_v53, 4  ;;  %v444_v58 = vsel %vm319_vm1, %v434_v53, %v443_v48  ;;  %v460_v59 = vperm.slane %v454_v54, %v1656_v15  ;;  %v410_v53 = vsel %vm319_vm1, %v409_v40, %v390_v13 }
 0x1a0   : > { %v452_v61 = vperm.slane %v444_v58, %v1656_v15  ;;  %v456_v62 = vsel %vm319_vm1, %v436_v44, %v455_v55  ;;  %v397_v44 = vrot.slane %v385_v28, 4  ;;  %v416_v0 = vperm.slane %v410_v53, %v1672_v29 }
 0x1a1   : > { %v442_v1 = vsel %vm319_vm1, %v441_v57, %v430_v33  ;;  %v464_v2 = vperm.slane %v456_v62, %v1656_v15  ;;  %v465_v3 = vrot.slane %v460_v59, 4  ;;  %v420_v57 = vperm.slane %v412_v43, %v1672_v29 }
 0x1a2   : > { %v448_v5 = vperm.slane %v442_v1, %v1656_v15  ;;  %v479_v6 = vrot.slane %v452_v61, 4  ;;  %v398_v60 = vsel %vm319_vm1, %v397_v44, %v379_v12 }
 0x1a3   : > { %v477_v11 = vrot.slane %v464_v2, 4 }
 0x1a4   : > { %v467_v16 = vrot.slane %v448_v5, 4  ;;  %v466_v17 = vsel %vm319_vm1, %v465_v3, %v448_v5  ;;  %v480_v18 = vsel %vm319_vm1, %v464_v2, %v479_v6  ;;  %v425_v6 = vrot.slane %v420_v57, 4 }
 0x1a5   : > { %v472_v20 = vperm.slane %v466_v17, %v1672_v29  ;;  %v478_v21 = vsel %vm319_vm1, %v477_v11, %v452_v61  ;;  %v488_v22 = vperm.slane %v480_v18, %v1672_v29  ;;  %v404_v11 = vperm.slane %v398_v60, %v1672_v29 }
 0x1a6   : > { %v468_v23 = vsel %vm319_vm1, %v460_v59, %v467_v16  ;;  %v484_v24 = vperm.slane %v478_v21, %v1672_v29  ;;  %v400_v59 = vsel %vm319_vm1, %v385_v28, %v399_v32  ;;  %v421_v17 = vrot.slane %v416_v0, 4 }
 0x1a7   : > { %v476_v26 = vperm.slane %v468_v23, %v1672_v29  ;;  %v495_v27 = vrot.slane %v488_v22, 4  ;;  %v489_v33 = vrot.slane %v472_v20, 4  ;;  %v408_v5 = vperm.slane %v400_v59, %v1672_v29 }
 0x1a8   : > { %v493_v31 = vrot.slane %v484_v24, 4  ;;  %v423_v22 = vrot.slane %v404_v11, 4 }
 0x1a9   : > { %v491_v34 = vrot.slane %v476_v26, 4  ;;  %v496_v35 = vsel %vm319_vm1, 0.0, %v495_v27  ;;  %v508_v36 = vsel %vm319_vm1, %v495_v27, %v484_v24  ;;  %v490_v49 = vsel %vm319_vm1, 0.0, %v489_v33 }
 0x1aa   : > { %v513_v37 = vrot.slane %v496_v35, 4  ;;  %v494_v38 = vsel %vm319_vm1, 0.0, %v493_v31  ;;  %v512_v39 = vperm.slane %v508_v36, %v1656_v15  ;;  %v426_v21 = vsel %vm319_vm1, %v425_v6, %v408_v5 }
 0x1ab   : > { %v492_v41 = vsel %vm319_vm1, 0.0, %v491_v34  ;;  %v497_v42 = vsel %vm319_vm1, %v491_v34, %v472_v20  ;;  %v422_v24 = vsel %vm319_vm1, %v421_v17, %v404_v11  ;;  %v424_v25 = vsel %vm319_vm1, %v416_v0, %v423_v22 }
 0x1ac   : > { %v502_v45 = vrot.slane %v492_v41, 4  ;;  %v501_v46 = vperm.slane %v497_v42, %v1656_v15  ;;  %v514_v47 = vsel %vm319_vm1, %v513_v37, %v494_v38  ;;  %v533_v48 = vrot.slane %v512_v39, 4 }
 0x1ad   : > { %v518_v50 = vperm.slane %v514_v47, %v1656_v15  ;;  %v427_v26 = vrot.slane %v408_v5, 4  ;;  %v1287_v37 = vpack.i.bf16 %v1645_v8, %v1639_v7  ;;  %v1292_v38 = vpack.i.bf16 %v1651_v10, %v1647_v9 }
 0x1ae   : > { %v503_v51 = vsel %vm319_vm1, %v502_v45, %v490_v49  ;;  %v521_v52 = vrot.slane %v501_v46, 4 }
 0x1af   : > { %v507_v54 = vperm.slane %v503_v51, %v1656_v15  ;;  %v534_v55 = vsel %vm319_vm1, %v518_v50, %v533_v48  ;;  %v531_v56 = vrot.slane %v518_v50, 4  ;;  %v428_v27 = vsel %vm319_vm1, %v420_v57, %v427_v26 }
 0x1b0   : > { %v542_v58 = vperm.slane %v534_v55, %v1672_v29 }
 0x1b1   : > { %v522_v61 = vsel %vm319_vm1, %v507_v54, %v521_v52  ;;  %v519_v62 = vrot.slane %v507_v54, 4  ;;  %v532_v63 = vsel %vm319_vm1, %v531_v56, %v512_v39 }
 0x1b2   : > { %v530_v1 = vperm.slane %v522_v61, %v1672_v29  ;;  %v547_v2 = vrot.slane %v542_v58, 4  ;;  %v538_v3 = vperm.slane %v532_v63, %v1672_v29 }
 0x1b3   : > { %v520_v4 = vsel %vm319_vm1, %v519_v62, %v501_v46 }
 0x1b4   : > { %v548_v12 = vsel %vm319_vm1, %v547_v2, %v530_v1  ;;  %v526_v13 = vperm.slane %v520_v4, %v1672_v29  ;;  %v543_v14 = vrot.slane %v538_v3, 4  ;;  %v549_v16 = vrot.slane %v530_v1, 4 }
 0x1b5   : > { %1195 = vmatpush.xpose.msk.msra.mxu3 %vm673_vm2, %v548_v12 }
 0x1b6   : > { %v544_v18 = vsel %vm319_vm1, %v543_v14, %v526_v13  ;;  %v550_v19 = vsel %vm319_vm1, %v542_v58, %v549_v16  ;;  %v545_v20 = vrot.slane %v526_v13, 4 }
 0x1b7   : > { %1191 = vmatpush.xpose.msk.msra.mxu1 %vm673_vm2, %v544_v18 }
 0x1b8   : > { %1196 = vmatmul.msk.f32.vlgmr.msra.gmra.mxu3 %vm673_vm2, %v426_v21  ;;  %v546_v23 = vsel %vm319_vm1, %v538_v3, %v545_v20 }
 0x1b9   : > { %1193 = vmatpush.xpose.msk.msra.mxu2 %vm673_vm2, %v546_v23 }
 0x1ba   : > { %1192 = vmatmul.msk.f32.vlgmr.msra.gmra.mxu1 %vm673_vm2, %v422_v24 }
 0x1bb   : > { %1197 = vmatpush.xpose.msk.msrb.mxu1 %vm673_vm2, %v550_v19 }
 0x1bc   : > { %1194 = vmatmul.msk.f32.vlgmr.msra.gmra.mxu2 %vm673_vm2, %v424_v25 }
 0x1c2   : > { %1198 = vmatmul.msk.f32.vlgmr.msrb.gmra.mxu1 %vm673_vm2, %v428_v27 }
 0x237   : > { %v697_v28 = vpop.f32.mrf.mxu1 }
 0x238   : > { %v778_v30 = vsel %vm673_vm2, %v697_v28, -inf }
 0x239   : > { %779 = vmax.xlane.f32.xlu1 %v778_v30 }
 0x23b   : > { %v749_v31 = vpop.f32.mrf.mxu3 }
 0x23c   : > { %v784_v32 = vsel %vm673_vm2, %v749_v31, -inf }
 0x23d   : > { %785 = vmax.xlane.f32.xlu0 %v784_v32 }
 0x23f   : > { %v723_v33 = vpop.f32.mrf.mxu2  ;;  %v775_v35 = vpop.f32.mrf.mxu1 }
 0x240   : > { %v781_v34 = vsel %vm673_vm2, %v723_v33, -inf  ;;  %v787_v36 = vsel %vm673_vm2, %v775_v35, -inf }
 0x241   : > { %782 = vmax.xlane.f32.xlu2 %v781_v34 }
 0x249   : > { %788 = vmax.xlane.f32.xlu2 %v787_v36 }
 0x252   : > { %1288 = vrot.lane.b32.xlu1 %v1287_v37, %s1487_s14 }
 0x261   : > { %1293 = vrot.lane.b32.xlu2 %v1292_v38, %s1487_s14  ;;  %s1421_s14 = scalar_lea.hbm %s1420_s11, 8 }
 0x262   : > { %p1422_p1 = scmp.ne.s32.totalorder %s1420_s11, %s1421_s14  ;;  %p1427_p7 = scmp.lt.s32.totalorder %s1425_s6, %s1421_s14 }
 0x264   : > { %p1423_p3 = pnand %p1422_p1, %p1590_p4  ;;  %p1428_p8 = por %p1427_p7, %p1426_p12 }
 0x266   : > { %p1424_p5 = pneg %p1423_p3 }
 0x268   : > { %p1429_p9 = pnand %p1428_p8, %p1424_p5 }
 0x2ac   : > { %v780_v39 = vpop.xlane.xlu1 %779 }
 0x2ad   : > { %v790_v40 = vsub.f32 %v697_v28, %v780_v39 }
 0x2af   : > { %v794_v41 = vmul.f32 1.442695, %v790_v40 }
 0x2b0   : > { %v786_v42 = vpop.xlane.xlu0 %785 }
 0x2b1   : > { %1299 = vpow2.f32 %v794_v41  ;;  %v792_v46 = vsub.f32 %v749_v31, %v786_v42 }
 0x2b3   : > { %v798_v8 = vmul.f32 1.442695, %v792_v46 }
 0x2b4   : > { %v783_v43 = vpop.xlane.xlu2 %782 }
 0x2b5   : > { %v791_v44 = vsub.f32 %v723_v33, %v783_v43 }
 0x2b7   : > { %v1762_v45 = vpop.eup %1299  ;;  %v796_v47 = vmul.f32 1.442695, %v791_v44 }
 0x2b8   : > { %v802_v7 = vsel %vm673_vm2, %v1762_v45, 0.0 }
 0x2b9   : > { %1301 = vpow2.f32 %v796_v47  ;;  %803 = vadd.xlane.f32.xlu0 %v802_v7 }
 0x2ba   : > { %1303 = vpow2.f32 %v798_v8 }
 0x2bc   : > { %v789_v48 = vpop.xlane.xlu2 %788 }
 0x2bd   : > { %v793_v9 = vsub.f32 %v775_v35, %v789_v48 }
 0x2bf   : > { %v1766_v10 = vpop.eup %1301  ;;  %v800_v49 = vmul.f32 1.442695, %v793_v9 }
 0x2c0   : > { %v805_v50 = vsel %vm673_vm2, %v1766_v10, 0.0  ;;  %v1770_v53 = vpop.eup %1303 }
 0x2c1   : > { %1305 = vpow2.f32 %v800_v49  ;;  %806 = vadd.xlane.f32.xlu0 %v805_v50  ;;  %v808_v63 = vsel %vm673_vm2, %v1770_v53, 0.0 }
 0x2c4   : > { %v1289_v51 = vpop.permute.xlu1 %1288  ;;  %v1294_v52 = vpop.permute.xlu2 %1293 }
 0x2c5   : > { %v1291_v54 = vunpack.i.h.bf16 %v1289_v51  ;;  %v1290_v55 = vunpack.i.l.bf16 %v1289_v51  ;;  %v1296_v56 = vunpack.i.h.bf16 %v1294_v52  ;;  %v1295_v57 = vunpack.i.l.bf16 %v1294_v52 }
 0x2c7   : > { %v1772_v58 = vpop.eup %1305  ;;  %v577_v59 = vrot.slane %v1291_v54, 4  ;;  %v565_v60 = vrot.slane %v1290_v55, 4  ;;  %v575_v61 = vrot.slane %v1296_v56, 4  ;;  %v563_v62 = vrot.slane %v1295_v57, 4 }
 0x2c8   : > { %v811_v0 = vsel %vm673_vm2, %v1772_v58, 0.0 }
 0x2c9   : > { %v576_v1 = vsel %vm319_vm1, %v575_v61, %v1291_v54  ;;  %v578_v2 = vsel %vm319_vm1, %v1296_v56, %v577_v59  ;;  %v564_v3 = vsel %vm319_vm1, %v563_v62, %v1290_v55  ;;  %v566_v4 = vsel %vm319_vm1, %v1295_v57, %v565_v60  ;;  %809 = vadd.xlane.f32.xlu0 %v808_v63 }
 0x2ca   : > { %v582_v5 = vperm.slane %v576_v1, %v1656_v15  ;;  %v586_v6 = vperm.slane %v578_v2, %v1656_v15  ;;  %v570_v11 = vperm.slane %v564_v3, %v1656_v15  ;;  %v574_v12 = vperm.slane %v566_v4, %v1656_v15  ;;  %812 = vadd.xlane.f32.xlu1 %v811_v0 }
 0x2cc   : > { %v587_v13 = vrot.slane %v582_v5, 4  ;;  %v599_v14 = vrot.slane %v586_v6, 4  ;;  %v589_v16 = vrot.slane %v570_v11, 4  ;;  %v601_v17 = vrot.slane %v574_v12, 4 }
 0x2ce   : > { %v588_v18 = vsel %vm319_vm1, %v587_v13, %v570_v11  ;;  %v590_v19 = vsel %vm319_vm1, %v582_v5, %v589_v16  ;;  %v600_v20 = vsel %vm319_vm1, %v599_v14, %v574_v12  ;;  %v602_v21 = vsel %vm319_vm1, %v586_v6, %v601_v17 }
 0x2cf   : > { %v594_v22 = vperm.slane %v588_v18, %v1672_v29  ;;  %v598_v23 = vperm.slane %v590_v19, %v1672_v29  ;;  %v606_v24 = vperm.slane %v600_v20, %v1672_v29  ;;  %v610_v25 = vperm.slane %v602_v21, %v1672_v29 }
 0x2d1   : > { %v613_v26 = vrot.slane %v598_v23, 4  ;;  %v615_v27 = vrot.slane %v606_v24, 4  ;;  %v617_v28 = vrot.slane %v610_v25, 4  ;;  %v611_v30 = vrot.slane %v594_v22, 4 }
 0x2d3   : > { %v618_v31 = vsel %vm319_vm1, 0.0, %v617_v28  ;;  %v614_v32 = vsel %vm319_vm1, 0.0, %v613_v26  ;;  %v619_v34 = vsel %vm319_vm1, %v613_v26, %v594_v22  ;;  %v630_v36 = vsel %vm319_vm1, %v617_v28, %v606_v24 }
 0x2d4   : > { %v635_v33 = vrot.slane %v618_v31, 4  ;;  %v624_v35 = vrot.slane %v614_v32, 4  ;;  %v612_v37 = vsel %vm319_vm1, 0.0, %v611_v30  ;;  %v616_v38 = vsel %vm319_vm1, 0.0, %v615_v27 }
 0x2d5   : > { %v623_v39 = vperm.slane %v619_v34, %v1656_v15  ;;  %v634_v40 = vperm.slane %v630_v36, %v1656_v15 }
 0x2d6   : > { %v625_v41 = vsel %vm319_vm1, %v624_v35, %v612_v37  ;;  %v636_v42 = vsel %vm319_vm1, %v635_v33, %v616_v38 }
 0x2d7   : > { %v629_v43 = vperm.slane %v625_v41, %v1656_v15  ;;  %v640_v44 = vperm.slane %v636_v42, %v1656_v15  ;;  %v643_v46 = vrot.slane %v623_v39, 4  ;;  %v655_v47 = vrot.slane %v634_v40, 4 }
 0x2d9   : > { %v644_v7 = vsel %vm319_vm1, %v629_v43, %v643_v46  ;;  %v656_v8 = vsel %vm319_vm1, %v640_v44, %v655_v47  ;;  %v641_v48 = vrot.slane %v629_v43, 4  ;;  %v653_v9 = vrot.slane %v640_v44, 4 }
 0x2da   : > { %v652_v49 = vperm.slane %v644_v7, %v1672_v29  ;;  %v664_v50 = vperm.slane %v656_v8, %v1672_v29 }
 0x2db   : > { %v642_v51 = vsel %vm319_vm1, %v641_v48, %v623_v39  ;;  %v654_v52 = vsel %vm319_vm1, %v653_v9, %v634_v40 }
 0x2dc   : > { %v669_v54 = vrot.slane %v664_v50, 4  ;;  %v671_v55 = vrot.slane %v652_v49, 4  ;;  %v648_v56 = vperm.slane %v642_v51, %v1672_v29  ;;  %v660_v57 = vperm.slane %v654_v52, %v1672_v29 }
 0x2de   : > { %v670_v59 = vsel %vm319_vm1, %v669_v54, %v652_v49  ;;  %v672_v60 = vsel %vm319_vm1, %v664_v50, %v671_v55  ;;  %v665_v61 = vrot.slane %v660_v57, 4  ;;  %v667_v62 = vrot.slane %v648_v56, 4 }
 0x2df   : > { %886 = vmatpush.msrb.mxu0 %v670_v59  ;;  %909 = vmatpush.msra.mxu1 %v672_v60 }
 0x2e0   : > { %v666_v63 = vsel %vm319_vm1, %v665_v61, %v648_v56  ;;  %v668_v0 = vsel %vm319_vm1, %v660_v57, %v667_v62 }
 0x2e1   : > { %840 = vmatpush.msrb.mxu2 %v666_v63  ;;  %863 = vmatpush.msrb.mxu3 %v668_v0 }
 0x32c   : > { %v804_v1 = vpop.xlane.xlu0 %803 }
 0x32d   : > { %1307 = vrcp.f32 %v804_v1 }
 0x333   : > { %v1308_v2 = vpop.eup %1307 }
 0x334   : > { %v807_v3 = vpop.xlane.xlu0 %806  ;;  %v818_v4 = vmul.f32 %v1308_v2, %v1762_v45 }
 0x335   : > { %1309 = vrcp.f32 %v807_v3 }
 0x336   : > { %1199 = vmatmul.msk.f32.vlgmr.msrb.gmra.mxu2 %vm673_vm2, %v818_v4 }
 0x33b   : > { %v1310_v5 = vpop.eup %1309 }
 0x33c   : > { %v810_v6 = vpop.xlane.xlu0 %809  ;;  %v819_v11 = vmul.f32 %v1310_v5, %v1766_v10 }
 0x33d   : > { %1311 = vrcp.f32 %v810_v6  ;;  %v813_v12 = vpop.xlane.xlu1 %812 }
 0x33e   : > { %1313 = vrcp.f32 %v813_v12  ;;  %1200 = vmatmul.msk.f32.vlgmr.msrb.gmra.mxu3 %vm673_vm2, %v819_v11 }
 0x343   : > { %v1312_v13 = vpop.eup %1311 }
 0x344   : > { %v1314_v14 = vpop.eup %1313  ;;  %v820_v16 = vmul.f32 %v1312_v13, %v1770_v53 }
 0x345   : > { %v821_v17 = vmul.f32 %v1314_v14, %v1772_v58 }
 0x346   : > { %1201 = vmatmul.msk.f32.vlgmr.msrb.gmra.mxu0 %vm673_vm2, %v820_v16 }
 0x347   : > { %1202 = vmatmul.msk.f32.vlgmr.msra.gmra.mxu1 %vm673_vm2, %v821_v17 }
 0x3b9   : > { %v842_v45 = vpop.f32.mrf.mxu2 }
 0x3ba   : > { %v916_v19 = vrot.slane %v842_v45, 4 }
 0x3c1   : > { %v865_v18 = vpop.f32.mrf.mxu3 }
 0x3c2   : > { %v928_v20 = vrot.slane %v865_v18, 4 }
 0x3c3   : > { %v888_v10 = vpop.f32.mrf.mxu0 }
 0x3c4   : > { %v914_v21 = vrot.slane %v888_v10, 4  ;;  %v917_v22 = vsel %vm319_vm1, %v888_v10, %v916_v19  ;;  %v911_v23 = vpop.f32.mrf.mxu1  ;;  %v1043_v10 = vld [vmem:[#allocation7 + $0x10] sm:$0xff] }
 0x3c5   : > { %v925_v24 = vperm.slane %v917_v22, %v1656_v15  ;;  %v926_v25 = vrot.slane %v911_v23, 4  ;;  %v929_v53 = vsel %vm319_vm1, %v911_v23, %v928_v20  ;;  %v1044_v20 = vld [vmem:[#allocation7 + $0x18] sm:$0xff] }
 0x3c6   : > { %v915_v58 = vsel %vm319_vm1, %v914_v21, %v842_v45  ;;  %v937_v26 = vperm.slane %v929_v53, %v1656_v15  ;;  %1064 = vmatpush.msra.mxu2 %v1044_v20  ;;  %v1041_v21 = vld [vmem:[#allocation7] sm:$0xff] }
 0x3c7   : > { %v921_v27 = vperm.slane %v915_v58, %v1656_v15  ;;  %v952_v28 = vrot.slane %v925_v24, 4  ;;  %v927_v30 = vsel %vm319_vm1, %v926_v25, %v865_v18 }
 0x3c8   : > { %v933_v31 = vperm.slane %v927_v30, %v1656_v15  ;;  %v950_v32 = vrot.slane %v937_v26, 4  ;;  %1065 = vmatpush.msra.mxu2 %v1043_v10 }
 0x3c9   : > { %v940_v33 = vrot.slane %v921_v27, 4  ;;  %v953_v34 = vsel %vm319_vm1, %v937_v26, %v952_v28  ;;  %v1298_v26 = vld [vmem:[%s1911_s4] ss:$0 sm:$0xff] }
 0x3ca   : > { %v938_v35 = vrot.slane %v933_v31, 4  ;;  %v951_v36 = vsel %vm319_vm1, %v950_v32, %v925_v24  ;;  %v961_v37 = vperm.slane %v953_v34, %v1672_v29 }
 0x3cb   : > { %v941_v38 = vsel %vm319_vm1, %v933_v31, %v940_v33  ;;  %v957_v39 = vperm.slane %v951_v36, %v1672_v29 }
 0x3cc   : > { %v939_v40 = vsel %vm319_vm1, %v938_v35, %v921_v27  ;;  %v949_v41 = vperm.slane %v941_v38, %v1672_v29  ;;  %v968_v42 = vrot.slane %v961_v37, 4 }
 0x3cd   : > { %v945_v43 = vperm.slane %v939_v40, %v1672_v29  ;;  %v966_v44 = vrot.slane %v957_v39, 4 }
 0x3ce   : > { %v964_v46 = vrot.slane %v949_v41, 4  ;;  %v969_v47 = vsel %vm319_vm1, 0.0, %v968_v42  ;;  %v981_v7 = vsel %vm319_vm1, %v968_v42, %v957_v39 }
 0x3cf   : > { %v962_v8 = vrot.slane %v945_v43, 4  ;;  %v985_v48 = vperm.slane %v981_v7, %v1656_v15  ;;  %v986_v9 = vrot.slane %v969_v47, 4  ;;  %v967_v50 = vsel %vm319_vm1, 0.0, %v966_v44 }
 0x3d0   : > { %v965_v49 = vsel %vm319_vm1, 0.0, %v964_v46  ;;  %v970_v51 = vsel %vm319_vm1, %v964_v46, %v945_v43 }
 0x3d1   : > { %v975_v52 = vrot.slane %v965_v49, 4  ;;  %v974_v54 = vperm.slane %v970_v51, %v1656_v15  ;;  %v987_v55 = vsel %vm319_vm1, %v986_v9, %v967_v50  ;;  %v963_v56 = vsel %vm319_vm1, 0.0, %v962_v8 }
 0x3d2   : > { %v991_v57 = vperm.slane %v987_v55, %v1656_v15  ;;  %v1006_v59 = vrot.slane %v985_v48, 4 }
 0x3d3   : > { %v976_v60 = vsel %vm319_vm1, %v975_v52, %v963_v56  ;;  %v994_v61 = vrot.slane %v974_v54, 4 }
 0x3d4   : > { %v980_v62 = vperm.slane %v976_v60, %v1656_v15  ;;  %v1007_v63 = vsel %vm319_vm1, %v991_v57, %v1006_v59  ;;  %v1004_v0 = vrot.slane %v991_v57, 4 }
 0x3d5   : > { %v1015_v1 = vperm.slane %v1007_v63, %v1672_v29 }
 0x3d6   : > { %v995_v2 = vsel %vm319_vm1, %v980_v62, %v994_v61  ;;  %v992_v3 = vrot.slane %v980_v62, 4  ;;  %v1005_v4 = vsel %vm319_vm1, %v1004_v0, %v985_v48 }
 0x3d7   : > { %v1003_v5 = vperm.slane %v995_v2, %v1672_v29  ;;  %v1020_v6 = vrot.slane %v1015_v1, 4  ;;  %v1011_v11 = vperm.slane %v1005_v4, %v1672_v29 }
 0x3d8   : > { %v993_v12 = vsel %vm319_vm1, %v992_v3, %v974_v54 }
 0x3d9   : > { %v1021_v13 = vsel %vm319_vm1, %v1020_v6, %v1003_v5  ;;  %v999_v15 = vperm.slane %v993_v12, %v1672_v29  ;;  %v1016_v14 = vrot.slane %v1011_v11, 4  ;;  %v1022_v18 = vrot.slane %v1003_v5, 4  ;;  %v1042_v29 = vld [vmem:[#allocation7 + $0x8] sm:$0xff] }
 0x3da   : > { %1029 = vrot.lane.b32.xlu0 %v1021_v13, %s1488_s27  ;;  %1066 = vmatpush.msra.mxu2 %v1042_v29 }
 0x3db   : > { %v1018_v16 = vrot.slane %v999_v15, 4  ;;  %v1017_v17 = vsel %vm319_vm1, %v1016_v14, %v999_v15  ;;  %v1023_v19 = vsel %vm319_vm1, %v1015_v1, %v1022_v18 }
 0x3dc   : > { %1067 = vmatpush.msra.mxu2 %v1041_v21 }
 0x3dd   : > { %v1019_v45 = vsel %vm319_vm1, %v1011_v11, %v1018_v16 }
 0x3de   : > { %1025 = vrot.lane.b32.xlu2 %v1019_v45, %s1489_s28 }
 0x3e6   : > { %1033 = vrot.lane.b32.xlu2 %v1023_v19, %s1490_s29 }
 0x438   : > { %v1026_v22 = vpop.permute.xlu2 %1025 }
 0x439   : > { %v1036_v23 = vsel %vm673_vm2, %v1017_v17, %v1026_v22 }
 0x440   : > { %v1034_v25 = vpop.permute.xlu2 %1033 }
 0x44c   : > { %v1030_v24 = vpop.permute.xlu0 %1029 }
 0x44d   : > { %v1038_v53 = vsel %vm1037_vm3, %v1036_v23, %v1030_v24 }
 0x44e   : > { %v1040_v58 = vsel %vm1039_vm4, %v1038_v53, %v1034_v25 }
 0x44f   : > { %1203 = vmatmul.msk.f32.vlgmr.msra.gmra.mxu2 %vm284_vm0, %v1040_v58 }
 0x4d2   : > { %v1069_v27 = vpop.f32.mrf.mxu2 }
 0x4d3   : > { %v1070_v28 = vadd.f32 %v1298_v26, %v1069_v27 }
 0x4d5   : > { %1072 = vst.msk [vmem:[%s274_s8] sm:$0xff] %vm284_vm0, %v1070_v28 }
 0x4d6   : > { %1432 = shalt.err (!%p1429_p9)
}
 0x4d7   : > { %1218 = dma.vmem_to_hbm [thread:$0]  (%p1590_p4), %s1087_s9, 128, %s1089_s10, %s1074_s25  }
 0x4d8 PF: > { %s1100_s22 = sand.u32 1, %s1463_s18   ;;  %p1919_p10 = scmp.ge.s32.totalorder %s1475_s21, 2 }
 0x4d9   : > { %s1101_s16 = scalar_lea.sflag [#allocation4], %s1100_s22 }
 0x4da   : > { %p1232_p13 = pnand %p1919_p10, %p1594_p6 }
 0x4dc   : > { %p1233_p11 = pneg %p1232_p13 }
 0x4de   : > { %1458 = dma.done.wait (%p1233_p11), %s1101_s16, 128  }
 0x4df   : > { %1460 = vsyncadd (%p1233_p11), %s1101_s16, 4294967168  ;;  %p19_p0 = scmp.ge.s32.totalorder %s1564_s12, 4   ;;  %s1920_s18 = smov %s1467_s19 }
 0x4e0   : > { %s1921_s19 = smov %s1471_s20  ;;  %s1922_s20 = smov %s1575_s15 }
 0x4e1   : > { %s1923_s21 = smov %s1564_s12  ;;  %21 = sbr.rel (!%p19_p0) target bundleno = 6 (0x6), region = 93 }
 0x4e6   :  { %1107 = vsyncpa [#allocation3], 1 }
 0x4e7   :  { %1109 = vsyncpa [#allocation3 + $0x1], 1 }
 0x4e8   :  { %1110 = vsyncpa [#allocation6], 1 }
 0x4e9   :  { %1111 = vsyncpa [#allocation4], 1 }
 0x4ea   :  { %1113 = vsyncpa [#allocation4 + $0x1], 1 }

</bundles_post_ra>
